<compile_context>
chip_gen: v5e
topology: v5e:2x2
jax: 0.10.0
libtpu: 0.0.40
codegen_flags: <defaults>
</compile_context>

<pallas_src>
import functools

import jax
import jax.numpy as jnp
from jax.experimental import pallas as pl
from jax.experimental.pallas import tpu as pltpu


# ----------------------------- Pallas kernel --------------------------------


def _clip_rwkv_kernel(x_ref, we_ref, be_ref, wkr_ref, wv_ref, pool_ref, out_ref,
                      *, dh):
    """One batch tile: patch-embed -> fused RWKV channel mix -> segmented mean pool.

    x_ref    : [M, Pdp]      flattened patches (M = TB*N rows), bf16
    we_ref   : [Pdp, D]      patch-embedding weight, bf16
    be_ref   : [1, D]        patch-embedding bias, f32
    wkr_ref  : [D, Dh + D]   fused key|receptance projection, bf16
    wv_ref   : [Dh, D]       value projection, bf16
    pool_ref : [TB, M]       block-diagonal 1/N pooling matrix, f32
    out_ref  : [1, TB, D]    pooled embeddings for this batch tile, f32
    """
    x = x_ref[...]  # [M, Pdp] bf16

    # Patch embedding (conv with kernel=stride=P expressed as a matmul).
    tok = jnp.dot(x, we_ref[...], preferred_element_type=jnp.float32)
    tok = tok + be_ref[...]  # [M, D] f32
    tok_b = tok.astype(jnp.bfloat16)

    # Fused key/receptance projection: one MXU push instead of two.
    kr = jnp.dot(tok_b, wkr_ref[...],
                 preferred_element_type=jnp.float32)  # [M, Dh + D] f32
    k = kr[:, :dh]                                    # lane-aligned slice
    r = jax.nn.sigmoid(kr[:, dh:])                    # [M, D] f32 (EUP)
    k = jnp.maximum(k, 0.0)
    k = k * k                                         # relu^2 key, f32

    cm = r * jnp.dot(k.astype(jnp.bfloat16), wv_ref[...],
                     preferred_element_type=jnp.float32)  # [M, D] f32

    feat = tok + cm  # residual, [M, D] f32

    # avg_layer: per-batch mean over N tokens via a block-diagonal matmul,
    # written as a single lane/sublane-dense [TB, D] slab.
    out_ref[0] = jnp.dot(pool_ref[...], feat, preferred_element_type=jnp.float32)


# ------------------------------ JAX wrapper ----------------------------------


def _patchify_nchw(image, patch):
    """NCHW [B, C, H, W] -> [B, N, C*P*P] with inner ordering (c, kh, kw)."""
    b, c, h, w = image.shape
    gh, gw = h // patch, w // patch
    x = image.reshape(b, c, gh, patch, gw, patch)
    x = jnp.transpose(x, (0, 2, 4, 1, 3, 5))  # [B, gh, gw, C, P, P]
    return x.reshape(b, gh * gw, c * patch * patch)


@functools.partial(jax.jit, static_argnames=("patch", "batch_tile"))
def warper_clip_v_t_rwkv_forward(image, params, *, patch, batch_tile):
    """Forward pass equivalent to WarperCLIP_V_T_RWKV (image_cls_token=False)."""
    x = _patchify_nchw(image, patch)  # [B, N, Pd] f32
    b, n, pd = x.shape
    d = params["w_embed"].shape[1]
    dh = params["w_v"].shape[0]

    tb = batch_tile
    assert b % tb == 0, "batch must be divisible by batch_tile"

    # Pad the patch (K) dimension to a lane multiple; zeros do not change results.
    pdp = ((pd + 127) // 128) * 128
    x = jnp.pad(x, ((0, 0), (0, 0), (0, pdp - pd)))
    we = jnp.pad(params["w_embed"], ((0, pdp - pd), (0, 0)))

    # bf16 MXU operands, f32 accumulation / elementwise math.
    x_rows = x.reshape(b * n, pdp).astype(jnp.bfloat16)  # fold batch into M
    we = we.astype(jnp.bfloat16)
    wkr = jnp.concatenate([params["w_k"], params["w_r"]], axis=1).astype(jnp.bfloat16)
    wv = params["w_v"].astype(jnp.bfloat16)
    be = params["b_embed"].astype(jnp.float32)

    # Block-diagonal [TB, TB*N] pooling matrix (1/N per token), same every tile.
    pool = jnp.repeat(jnp.eye(tb, dtype=jnp.float32), n, axis=1) * (1.0 / n)

    m = tb * n
    out = pl.pallas_call(
        functools.partial(_clip_rwkv_kernel, dh=dh),
        out_shape=jax.ShapeDtypeStruct((b // tb, tb, d), jnp.float32),
        grid_spec=pltpu.PrefetchScalarGridSpec(
            num_scalar_prefetch=0,
            grid=(b // tb,),
            in_specs=[
                pl.BlockSpec((m, pdp), lambda i: (i, 0)),       # patch rows (tile i)
                pl.BlockSpec((pdp, d), lambda i: (0, 0)),        # W_embed
                pl.BlockSpec((1, d), lambda i: (0, 0)),          # b_embed
                pl.BlockSpec((d, dh + d), lambda i: (0, 0)),     # fused W_k | W_r
                pl.BlockSpec((dh, d), lambda i: (0, 0)),         # W_v
                pl.BlockSpec((tb, m), lambda i: (0, 0)),         # pooling matrix
            ],
            out_specs=pl.BlockSpec((1, tb, d), lambda i: (i, 0, 0)),
        ),
        compiler_params=pltpu.CompilerParams(
            dimension_semantics=("parallel",),
            vmem_limit_bytes=32 * 1024 * 1024,
        ),
    )(x_rows, we, be, wkr, wv, pool)
    return out.reshape(b, d)  # [B, D]


# Pure-JAX reference (same bf16 operand / f32 accumulation recipe) for checking.
def _reference_forward(image, params, *, patch):
    x = _patchify_nchw(image, patch).astype(jnp.bfloat16)
    we = params["w_embed"].astype(jnp.bfloat16)
    tok = jnp.einsum("bnp,pd->bnd", x, we,
                     preferred_element_type=jnp.float32) + params["b_embed"]
    tok_b = tok.astype(jnp.bfloat16)
    k = jnp.maximum(
        jnp.einsum("bnd,dh->bnh", tok_b, params["w_k"].astype(jnp.bfloat16),
                   preferred_element_type=jnp.float32), 0.0)
    k = k * k
    r = jax.nn.sigmoid(
        jnp.einsum("bnd,de->bne", tok_b, params["w_r"].astype(jnp.bfloat16),
                   preferred_element_type=jnp.float32))
    cm = r * jnp.einsum("bnh,hd->bnd", k.astype(jnp.bfloat16),
                        params["w_v"].astype(jnp.bfloat16),
                        preferred_element_type=jnp.float32)
    feat = tok + cm
    return jnp.mean(feat, axis=1)


# ------------------------------- Main ----------------------------------------


def _init_params(key, pd, d, dh):
    keys = jax.random.split(key, 5)
    scale_e = 1.0 / jnp.sqrt(jnp.float32(pd))
    scale_d = 1.0 / jnp.sqrt(jnp.float32(d))
    scale_h = 1.0 / jnp.sqrt(jnp.float32(dh))
    return {
        "w_embed": jax.random.normal(keys[0], (pd, d), jnp.float32) * scale_e,
        "b_embed": jax.random.normal(keys[1], (1, d), jnp.float32) * 0.02,
        "w_k": jax.random.normal(keys[2], (d, dh), jnp.float32) * scale_d,
        "w_v": jax.random.normal(keys[3], (dh, d), jnp.float32) * scale_h,
        "w_r": jax.random.normal(keys[4], (d, d), jnp.float32) * scale_d,
    }


if __name__ == "__main__":
    key = jax.random.PRNGKey(0)
    k_img, k_par = jax.random.split(key)

    B, C, H, W = 16, 3, 16, 16
    PATCH = 4                 # -> N = 16 tokens per image
    D, DH = 128, 256          # lane-dense embedding width, lane-aligned hidden
    PD = C * PATCH * PATCH    # 48 (padded to 128 inside the wrapper)
    BATCH_TILE = 8            # M = 128 rows / step, (8,128) dense output block,
                              # 2 grid steps so v7x megacore can shard

    image = jax.random.normal(k_img, (B, C, H, W), jnp.float32)
    params = _init_params(k_par, PD, D, DH)

    out = warper_clip_v_t_rwkv_forward(
        image, params, patch=PATCH, batch_tile=BATCH_TILE)
    out = jax.block_until_ready(out)

    ref = _reference_forward(image, params, patch=PATCH)
    assert out.shape == (B, D)
    assert jnp.allclose(out, ref, atol=2e-3, rtol=2e-3), "mismatch vs reference"

    print("KERNEL_OK")
</pallas_src>

<mosaic_0001>
module attributes {stable_mosaic.version = 11 : i64} {
  func.func @_clip_rwkv_kernel(%arg0: i32, %arg1: memref<128x128xbf16, #tpu.memory_space<vmem>>, %arg2: memref<128x128xbf16, #tpu.memory_space<vmem>>, %arg3: memref<1x128xf32, #tpu.memory_space<vmem>>, %arg4: memref<128x384xbf16, #tpu.memory_space<vmem>>, %arg5: memref<256x128xbf16, #tpu.memory_space<vmem>>, %arg6: memref<8x128xf32, #tpu.memory_space<vmem>>, %arg7: memref<1x8x128xf32, #tpu.memory_space<vmem>>) attributes {dimension_semantics = [#tpu.dimension_semantics<parallel>], iteration_bounds = array<i64: 2>, scalar_prefetch = 0 : i64, scratch_operands = 0 : i64, tpu.core_type = #tpu.core_type<tc>, window_params = [{transform_indices = @transform_0, window_bounds = array<i64: 128, 128>}, {pipeline_mode = #tpu.pipeline_mode<synchronous>, transform_indices = @transform_1, window_bounds = array<i64: 128, 128>}, {pipeline_mode = #tpu.pipeline_mode<synchronous>, transform_indices = @transform_2, window_bounds = array<i64: 1, 128>}, {pipeline_mode = #tpu.pipeline_mode<synchronous>, transform_indices = @transform_3, window_bounds = array<i64: 128, 384>}, {pipeline_mode = #tpu.pipeline_mode<synchronous>, transform_indices = @transform_4, window_bounds = array<i64: 256, 128>}, {pipeline_mode = #tpu.pipeline_mode<synchronous>, transform_indices = @transform_5, window_bounds = array<i64: 8, 128>}, {transform_indices = @transform_6, window_bounds = array<i64: 1, 8, 128>}]} {
    %c0 = arith.constant 0 : index
    %c0_0 = arith.constant 0 : index
    %0 = vector.load %arg1[%c0, %c0_0] : memref<128x128xbf16, #tpu.memory_space<vmem>>, vector<128x128xbf16>
    %c0_1 = arith.constant 0 : index
    %c0_2 = arith.constant 0 : index
    %1 = vector.load %arg2[%c0_1, %c0_2] : memref<128x128xbf16, #tpu.memory_space<vmem>>, vector<128x128xbf16>
    %cst = arith.constant dense<0.000000e+00> : vector<128x128xf32>
    %2 = tpu.matmul %0, %1, %cst {dimension_numbers = #tpu.dot_dimension_numbers<[1], [0], [0], [1], [0, 0, 1, 1], [], []>} : vector<128x128xbf16>, vector<128x128xbf16>, vector<128x128xf32> -> vector<128x128xf32>
    %c0_3 = arith.constant 0 : index
    %c0_4 = arith.constant 0 : index
    %3 = vector.load %arg3[%c0_3, %c0_4] : memref<1x128xf32, #tpu.memory_space<vmem>>, vector<1x128xf32>
    %4 = vector.broadcast %3 : vector<1x128xf32> to vector<128x128xf32>
    %5 = arith.addf %2, %4 : vector<128x128xf32>
    %6 = arith.truncf %5 : vector<128x128xf32> to vector<128x128xbf16>
    %c0_5 = arith.constant 0 : index
    %c0_6 = arith.constant 0 : index
    %7 = vector.load %arg4[%c0_5, %c0_6] : memref<128x384xbf16, #tpu.memory_space<vmem>>, vector<128x384xbf16>
    %cst_7 = arith.constant dense<0.000000e+00> : vector<128x384xf32>
    %8 = tpu.matmul %6, %7, %cst_7 {dimension_numbers = #tpu.dot_dimension_numbers<[1], [0], [0], [1], [0, 0, 1, 1], [], []>} : vector<128x128xbf16>, vector<128x384xbf16>, vector<128x384xf32> -> vector<128x384xf32>
    %9 = vector.extract_strided_slice %8 {offsets = [0, 0], sizes = [128, 256], strides = [1, 1]} : vector<128x384xf32> to vector<128x256xf32>
    %10 = vector.extract_strided_slice %8 {offsets = [0, 256], sizes = [128, 128], strides = [1, 1]} : vector<128x384xf32> to vector<128x128xf32>
    %11 = arith.negf %10 : vector<128x128xf32>
    %12 = math.exp %11 : vector<128x128xf32>
    %cst_8 = arith.constant 1.000000e+00 : f32
    %13 = vector.broadcast %cst_8 : f32 to vector<128x128xf32>
    %14 = arith.addf %13, %12 : vector<128x128xf32>
    %15 = arith.divf %13, %14 : vector<128x128xf32>
    %cst_9 = arith.constant 0.000000e+00 : f32
    %16 = vector.broadcast %cst_9 : f32 to vector<128x256xf32>
    %17 = arith.maximumf %9, %16 : vector<128x256xf32>
    %18 = arith.mulf %17, %17 : vector<128x256xf32>
    %19 = arith.truncf %18 : vector<128x256xf32> to vector<128x256xbf16>
    %c0_10 = arith.constant 0 : index
    %c0_11 = arith.constant 0 : index
    %20 = vector.load %arg5[%c0_10, %c0_11] : memref<256x128xbf16, #tpu.memory_space<vmem>>, vector<256x128xbf16>
    %cst_12 = arith.constant dense<0.000000e+00> : vector<128x128xf32>
    %21 = tpu.matmul %19, %20, %cst_12 {dimension_numbers = #tpu.dot_dimension_numbers<[1], [0], [0], [1], [0, 0, 1, 1], [], []>} : vector<128x256xbf16>, vector<256x128xbf16>, vector<128x128xf32> -> vector<128x128xf32>
    %22 = arith.mulf %15, %21 : vector<128x128xf32>
    %23 = arith.addf %5, %22 : vector<128x128xf32>
    %c0_13 = arith.constant 0 : index
    %c0_14 = arith.constant 0 : index
    %24 = vector.load %arg6[%c0_13, %c0_14] : memref<8x128xf32, #tpu.memory_space<vmem>>, vector<8x128xf32>
    %cst_15 = arith.constant dense<0.000000e+00> : vector<8x128xf32>
    %25 = tpu.matmul %24, %23, %cst_15 {dimension_numbers = #tpu.dot_dimension_numbers<[1], [0], [0], [1], [0, 0, 1, 1], [], []>} : vector<8x128xf32>, vector<128x128xf32>, vector<8x128xf32> -> vector<8x128xf32>
    %c0_16 = arith.constant 0 : index
    %c0_17 = arith.constant 0 : index
    %c0_18 = arith.constant 0 : index
    %26 = vector.load %arg7[%c0_16, %c0_17, %c0_18] : memref<1x8x128xf32, #tpu.memory_space<vmem>>, vector<1x8x128xf32>
    %27 = vector.shape_cast %26 : vector<1x8x128xf32> to vector<8x128xf32>
    %28 = vector.shape_cast %25 : vector<8x128xf32> to vector<1x8x128xf32>
    tpu.vector_store %arg7[%c0_16, %c0_17, %c0_18], %28 {strides = array<i32>} : memref<1x8x128xf32, #tpu.memory_space<vmem>>, vector<1x8x128xf32>,
    return
  }
  func.func @transform_0(%arg0: i32) -> (i32, i32) {
    %c0_i32 = arith.constant 0 : i32
    %c0_i32_0 = arith.constant 0 : i32
    return %arg0, %c0_i32 : i32, i32
  }
  func.func @transform_1(%arg0: i32) -> (i32, i32) {
    %c0_i32 = arith.constant 0 : i32
    %c0_i32_0 = arith.constant 0 : i32
    %c0_i32_1 = arith.constant 0 : i32
    return %c0_i32, %c0_i32_0 : i32, i32
  }
  func.func @transform_2(%arg0: i32) -> (i32, i32) {
    %c0_i32 = arith.constant 0 : i32
    %c0_i32_0 = arith.constant 0 : i32
    %c0_i32_1 = arith.constant 0 : i32
    return %c0_i32, %c0_i32_0 : i32, i32
  }
  func.func @transform_3(%arg0: i32) -> (i32, i32) {
    %c0_i32 = arith.constant 0 : i32
    %c0_i32_0 = arith.constant 0 : i32
    %c0_i32_1 = arith.constant 0 : i32
    return %c0_i32, %c0_i32_0 : i32, i32
  }
  func.func @transform_4(%arg0: i32) -> (i32, i32) {
    %c0_i32 = arith.constant 0 : i32
    %c0_i32_0 = arith.constant 0 : i32
    %c0_i32_1 = arith.constant 0 : i32
    return %c0_i32, %c0_i32_0 : i32, i32
  }
  func.func @transform_5(%arg0: i32) -> (i32, i32) {
    %c0_i32 = arith.constant 0 : i32
    %c0_i32_0 = arith.constant 0 : i32
    %c0_i32_1 = arith.constant 0 : i32
    return %c0_i32, %c0_i32_0 : i32, i32
  }
  func.func @transform_6(%arg0: i32) -> (i32, i32, i32) {
    %c0_i32 = arith.constant 0 : i32
    %c0_i32_0 = arith.constant 0 : i32
    %c0_i32_1 = arith.constant 0 : i32
    return %arg0, %c0_i32, %c0_i32_0 : i32, i32, i32
  }
}

</mosaic_0001>

<bundles_post_ra>
// kernel: warper_clip_v_t_rwkv_forward.1
= control target key start
LH: loop header
LB: loop body
LE: loop exit
PB: predicated region body
PF: predicated region fallthrough
CT: control target
= control target key end

     0   :  { %11 = vsyncpa [#allocation3], 0  ;;  %s2795_s0 = inlined_call_operand.vmem [shape: bf16[256,128], index: 0, kind: input, shape index: {}]   ;;  %s2796_s1 = inlined_call_operand.vmem [shape: bf16[128,128], index: 1, kind: input, shape index: {}]   ;;  %s2797_s2 = inlined_call_operand.vmem [shape: f32[1,128], index: 2, kind: input, shape index: {}]   ;;  %s2798_s3 = inlined_call_operand.vmem [shape: bf16[128,384], index: 3, kind: input, shape index: {}]   ;;  %s2799_s4 = inlined_call_operand.vmem [shape: bf16[256,128], index: 4, kind: input, shape index: {}]   ;;  %s2800_s5 = inlined_call_operand.vmem [shape: f32[8,128], index: 5, kind: input, shape index: {}]   ;;  %s2801_s6 = inlined_call_operand.hbm [shape: f32[2,8,128], index: 6, kind: output, shape index: {}]  }
   0x1   :  { %13 = vsyncpa [#allocation3 + $0x1], 0  ;;  %s2013_s21 = smov 0   ;;  %s2015_s22 = smov 0  }
   0x2   :  { %s2017_s23 = smov 0   ;;  %s2019_s24 = smov 0  }
   0x3 LB: > { %s2034_s25 = sadd.s32 4294967295, %s1976_s24   ;;  %s1487_s26 = sadd.s32 4294967294, %s1976_s24   ;;  %s1976_s24 = sphi %s2019_s24, %s2862_s24   ;;  %s1972_s23 = sphi %s2017_s23, %s2861_s23   ;;  %s1968_s22 = sphi %s2015_s22, %s2860_s22   ;;  %s1964_s21 = sphi %s2013_s21, %s2859_s21  }
   0x4   : > { %s2038_s27 = sadd.s32 1, %s1976_s24   ;;  %s157_s28 = sadd.s32 1, %s1972_s23 }
   0x5   : > { %s154_s29 = ssub.s32 %s1976_s24, %s2038_s27  ;;  %p167_p0 = scmp.ne.s32.totalorder %s1972_s23, %s1968_s22 }
   0x6   : > { %p155_p1 = scmp.eq.s32.totalorder %s154_s29, 0  ;;  %p168_p2 = scmp.eq.s32.totalorder %s2034_s25, 1 }
   0x7   : > { %p173_p3 = scmp.ne.s32.totalorder %s1968_s22, %s1964_s21  ;;  %p174_p4 = scmp.eq.s32.totalorder %s1487_s26, 1 }
   0x8   : > { %s2049_s30 = scalar_select %p155_p1, %s1972_s23, %s157_s28  }
   0x9   : > { %p2051_p5 = por %p168_p2, %p167_p0  ;;  %p2055_p6 = por %p174_p4, %p173_p3 }
   0xa   : > { %p1490_p7 = scmp.ge.s32.totalorder %s1976_s24, 1  ;;  %p216_p8 = scmp.lt.s32.totalorder %s1976_s24, 3 }
   0xc   : > { %p217_p9 = pnand %p1490_p7, %p216_p8 }
   0xe   : > { %220 = sbr.rel (%p217_p9) target bundleno = 807 (0x327), region = 44 }
  0x13   : > { %v1753_v0 = vld [vmem:[%s2796_s1 + $0x38] sm:$0xff]  ;;  %v1752_v1 = vld [vmem:[%s2796_s1 + $0x30] sm:$0xff]  ;;  %v1751_v2 = vld [vmem:[%s2796_s1 + $0x28] sm:$0xff]  ;;  %s1492_s17 = sshll.u32 %s2034_s25, 4  ;;  %s243_s15 = sand.u32 1, %s1968_s22  }
  0x14   : > { %384 = vmatpush.bf16.msra.mxu0 %v1753_v0  ;;  %1794 = vmatpush.bf16.msra.mxu3 %v1753_v0  ;;  %v1750_v3 = vld [vmem:[%s2796_s1 + $0x20] sm:$0xff]  ;;  %v1749_v4 = vld [vmem:[%s2796_s1 + $0x18] sm:$0xff]  ;;  %p247_p10 = scmp.lt.s32.totalorder %s1492_s17, 31  ;;  %v1748_v5 = vld [vmem:[%s2796_s1 + $0x10] sm:$0xff]  ;;  %s1491_s16 = sshll.u32 %s243_s15, 3 }
  0x15   : > { %v1747_v6 = vld [vmem:[%s2796_s1 + $0x8] sm:$0xff]  ;;  %v1746_v7 = vld [vmem:[%s2796_s1] sm:$0xff]  ;;  %v1776_v15 = vld [vmem:[%s2798_s3 + $0xb0] sm:$0xf0]  ;;  %s1413_s29 = scalar_lea.sflag [#allocation3], %s243_s15  ;;  %s1934_s12 = scalar_lea.hbm %s2801_s6, 16 }
  0x16   : > { %s2864_s17 = smov (!%p247_p10, %s1492_s17), 31  ;;  %v1644_v14 = vld [vmem:[%s2798_s3 + $0xa8] sm:$0xf]  ;;  %v1652_v16 = vld [vmem:[%s2798_s3 + $0xb0] sm:$0xf] }
  0x17   : > { %s1493_s9 = sshll.u32 %s2864_s17, 2  ;;  %v1645_v17 = vor.u32 %v1776_v15, %v1644_v14  ;;  %v1777_v18 = vld [vmem:[%s2798_s3 + $0xb8] sm:$0xf0]  ;;  %v1632_v19 = vld [vmem:[%s2798_s3 + $0x90] sm:$0xf]  ;;  %s1735_s17 = sshll.u32 %s2034_s25, 3 }
  0x18   : > { %385 = vmatpush.bf16.msra.mxu0 %v1752_v1  ;;  %1795 = vmatpush.bf16.msra.mxu3 %v1752_v1  ;;  %s2089_s14 = scalar_lea.vmem %s2795_s0, %s1493_s9  ;;  %v1773_v20 = vld [vmem:[%s2798_s3 + $0x98] sm:$0xf0]  ;;  %v1653_v21 = vor.u32 %v1777_v18, %v1652_v16  ;;  %v1640_v22 = vld [vmem:[%s2798_s3 + $0x98] sm:$0xf]  ;;  %v1774_v23 = vld [vmem:[%s2798_s3 + $0xa0] sm:$0xf0]  ;;  %s1423_s20 = scalar_lea.hbm %s2801_s6, %s1735_s17 }
  0x19   : > { %v1738_v8 = vld [vmem:[%s2089_s14] sm:$0xff]  ;;  %v1743_v9 = vld [vmem:[%s2089_s14 + $0x28] sm:$0xff]  ;;  %v1744_v11 = vld [vmem:[%s2089_s14 + $0x30] sm:$0xff]  ;;  %601 = vmatpush.bf16.msra.mxu1 %v1645_v17  ;;  %v1633_v24 = vor.u32 %v1773_v20, %v1632_v19  ;;  %1802 = vmatpush.bf16.msra.mxu2 %v1645_v17  ;;  %v1641_v25 = vor.u32 %v1774_v23, %v1640_v22  ;;  %s1427_s28 = sshll.u32 %s1423_s20, 4  ;;  %s1428_s28 = int_to_ptr.hbm [resolvable:$true] %s1427_s28 }
  0x1a   : > { %v1739_v10 = vld [vmem:[%s2089_s14 + $0x8] sm:$0xff]  ;;  %v1740_v12 = vld [vmem:[%s2089_s14 + $0x10] sm:$0xff]  ;;  %v1745_v13 = vld [vmem:[%s2089_s14 + $0x38] sm:$0xff]  ;;  %s1928_s9 = sshra.s32 %s1428_s28, 4  ;;  %s1929_s9 = int_to_ptr.hbm [resolvable:$true] %s1928_s9 }
  0x1b   : > { %v1620_v26 = vld [vmem:[%s2798_s3 + $0x78] sm:$0xf]  ;;  %v1770_v27 = vld [vmem:[%s2798_s3 + $0x80] sm:$0xf0]  ;;  %v1628_v28 = vld [vmem:[%s2798_s3 + $0x80] sm:$0xf]  ;;  %p1935_p0 = scmp.lt.s32.totalorder %s1929_s9, %s2801_s6 }
  0x1c   : > { %386 = vmatpush.bf16.msra.mxu0 %v1751_v2  ;;  %1796 = vmatpush.bf16.msra.mxu3 %v1751_v2  ;;  %v1771_v29 = vld [vmem:[%s2798_s3 + $0x88] sm:$0xf0]  ;;  %v1621_v30 = vor.u32 %v1770_v27, %v1620_v26  ;;  %v1608_v32 = vld [vmem:[%s2798_s3 + $0x60] sm:$0xf]  ;;  %v1616_v34 = vld [vmem:[%s2798_s3 + $0x68] sm:$0xf] }
  0x1d   : > { %602 = vmatpush.bf16.msra.mxu1 %v1633_v24  ;;  %1803 = vmatpush.bf16.msra.mxu2 %v1633_v24  ;;  %v1629_v31 = vor.u32 %v1771_v29, %v1628_v28  ;;  %v1767_v33 = vld [vmem:[%s2798_s3 + $0x68] sm:$0xf0]  ;;  %v1768_v35 = vld [vmem:[%s2798_s3 + $0x70] sm:$0xf0]  ;;  %v1741_v37 = vld [vmem:[%s2089_s14 + $0x18] sm:$0xff]  ;;  %s1930_s10 = scalar_lea.hbm %s1929_s9, 8 }
  0x1e   : > { %v1609_v36 = vor.u32 %v1767_v33, %v1608_v32  ;;  %v1617_v38 = vor.u32 %v1768_v35, %v1616_v34  ;;  %v1596_v39 = vld [vmem:[%s2798_s3 + $0x48] sm:$0xf]  ;;  %v1764_v40 = vld [vmem:[%s2798_s3 + $0x50] sm:$0xf0]  ;;  %v1604_v41 = vld [vmem:[%s2798_s3 + $0x50] sm:$0xf]  ;;  %p1931_p11 = scmp.ne.s32.totalorder %s1929_s9, %s1930_s10  ;;  %p1936_p1 = scmp.lt.s32.totalorder %s1934_s12, %s1930_s10 }
  0x1f   : > { %v1765_v42 = vld [vmem:[%s2798_s3 + $0x58] sm:$0xf0]  ;;  %v1597_v43 = vor.u32 %v1764_v40, %v1596_v39  ;;  %v1742_v45 = vld [vmem:[%s2089_s14 + $0x20] sm:$0xff]  ;;  %v1584_v46 = vld [vmem:[%s2798_s3 + $0x30] sm:$0xf]  ;;  %s245_s14 = scalar_lea.vmem [#allocation2], %s1491_s16 }
  0x20   : > { %387 = vmatpush.bf16.msra.mxu0 %v1750_v3  ;;  %1797 = vmatpush.bf16.msra.mxu3 %v1750_v3  ;;  %v1605_v44 = vor.u32 %v1765_v42, %v1604_v41  ;;  %v1761_v47 = vld [vmem:[%s2798_s3 + $0x38] sm:$0xf0]  ;;  %v1592_v48 = vld [vmem:[%s2798_s3 + $0x38] sm:$0xf]  ;;  %v1762_v50 = vld [vmem:[%s2798_s3 + $0x40] sm:$0xf0]  ;;  %p1932_p12 = pnand %p1931_p11, %p2051_p5  ;;  %p1937_p2 = por %p1936_p1, %p1935_p0 }
  0x21   : > { %603 = vmatpush.bf16.msra.mxu1 %v1621_v30  ;;  %1804 = vmatpush.bf16.msra.mxu2 %v1621_v30  ;;  %v1585_v49 = vor.u32 %v1761_v47, %v1584_v46  ;;  %v1593_v51 = vor.u32 %v1762_v50, %v1592_v48  ;;  %v1572_v52 = vld [vmem:[%s2798_s3 + $0x18] sm:$0xf]  ;;  %v1758_v53 = vld [vmem:[%s2798_s3 + $0x20] sm:$0xf0]  ;;  %v1580_v54 = vld [vmem:[%s2798_s3 + $0x20] sm:$0xf] }
  0x22   : > { %v1573_v55 = vor.u32 %v1758_v53, %v1572_v52  ;;  %v1759_v56 = vld [vmem:[%s2798_s3 + $0x28] sm:$0xf0]  ;;  %v1560_v58 = vld [vmem:[%s2798_s3] sm:$0xf]  ;;  %v1568_v60 = vld [vmem:[%s2798_s3 + $0x8] sm:$0xf]  ;;  %p1933_p13 = pneg %p1932_p12 }
  0x23   : > { %v1581_v57 = vor.u32 %v1759_v56, %v1580_v54  ;;  %v1755_v59 = vld [vmem:[%s2798_s3 + $0x8] sm:$0xf0]  ;;  %v1756_v62 = vld [vmem:[%s2798_s3 + $0x10] sm:$0xf0]  ;;  %v1646_v2 = vld [vmem:[%s2798_s3 + $0xb4] sm:$0xf0] }
  0x24   : > { %388 = vmatpush.bf16.msra.mxu0 %v1749_v4  ;;  %1798 = vmatpush.bf16.msra.mxu3 %v1749_v4  ;;  %v1561_v61 = vor.u32 %v1755_v59, %v1560_v58  ;;  %v1569_v63 = vor.u32 %v1756_v62, %v1568_v60  ;;  %v1775_v1 = vld [vmem:[%s2798_s3 + $0xac] sm:$0xf]  ;;  %v2204_v4 = vld [vmem:[%s2797_s2] ss:$0 sm:$0xff]  ;;  %v1766_v16 = vld [vmem:[%s2798_s3 + $0x64] sm:$0xf]  ;;  %p1938_p3 = pnand %p1937_p2, %p1933_p13 }
  0x25   : > { %604 = vmatpush.bf16.msra.mxu1 %v1609_v36  ;;  %1805 = vmatpush.bf16.msra.mxu2 %v1609_v36  ;;  %v1649_v3 = vor.u32 %v1775_v1, %v1646_v2  ;;  %v1610_v17 = vld [vmem:[%s2798_s3 + $0x6c] sm:$0xf0]  ;;  %v1763_v24 = vld [vmem:[%s2798_s3 + $0x4c] sm:$0xf]  ;;  %v1760_v27 = vld [vmem:[%s2798_s3 + $0x34] sm:$0xf] }
  0x26   : > { %v1613_v19 = vor.u32 %v1766_v16, %v1610_v17  ;;  %v1586_v28 = vld [vmem:[%s2798_s3 + $0x3c] sm:$0xf0]  ;;  %v1757_v34 = vld [vmem:[%s2798_s3 + $0x1c] sm:$0xf]  ;;  %v1574_v35 = vld [vmem:[%s2798_s3 + $0x24] sm:$0xf0] }
  0x27   : > { %v1589_v30 = vor.u32 %v1760_v27, %v1586_v28  ;;  %v1577_v36 = vor.u32 %v1757_v34, %v1574_v35  ;;  %v1562_v39 = vld [vmem:[%s2798_s3 + $0xc] sm:$0xf0]  ;;  %v1785_v1 = vld [vmem:[%s2799_s4 + $0x38] sm:$0xff]  ;;  %s1425_s26 = sshll.u32 %s245_s14, 4  ;;  %s1426_s26 = int_to_ptr.vmem [resolvable:$true] %s1425_s26 }
  0x28   : > { %389 = vmatpush.bf16.msra.mxu0 %v1748_v5  ;;  %1799 = vmatpush.bf16.msra.mxu3 %v1748_v5  ;;  %v1772_v5 = vld [vmem:[%s2798_s3 + $0x94] sm:$0xf]  ;;  %v1793_v16 = vld [vmem:[%s2799_s4 + $0x78] sm:$0xff] }
  0x29   : > { %605 = vmatpush.bf16.msra.mxu1 %v1597_v43  ;;  %1806 = vmatpush.bf16.msra.mxu2 %v1597_v43  ;;  %v1784_v2 = vld [vmem:[%s2799_s4 + $0x30] sm:$0xff] }
  0x2c   : > { %390 = vmatpush.bf16.msra.mxu0 %v1747_v6  ;;  %1800 = vmatpush.bf16.msra.mxu3 %v1747_v6  ;;  %v1634_v6 = vld [vmem:[%s2798_s3 + $0x9c] sm:$0xf0] }
  0x2d   : > { %606 = vmatpush.bf16.msra.mxu1 %v1585_v49  ;;  %1807 = vmatpush.bf16.msra.mxu2 %v1585_v49 }
  0x30   : > { %391 = vmatpush.bf16.msra.mxu0 %v1746_v7  ;;  %1801 = vmatpush.bf16.msra.mxu3 %v1746_v7 }
  0x31   : > { %607 = vmatpush.bf16.msra.mxu1 %v1573_v55  ;;  %1808 = vmatpush.bf16.msra.mxu2 %v1573_v55 }
  0x33   : > { %392 = vmatmul.bf16.vlgmr.msra.gmra.mxu0 %v1738_v8  ;;  %417 = vmatmul.bf16.vlgmr.msra.gmra.mxu3 %v1743_v9  ;;  %v1637_v8 = vor.u32 %v1772_v5, %v1634_v6  ;;  %v1781_v5 = vld [vmem:[%s2799_s4 + $0x18] sm:$0xff]  ;;  %v1780_v6 = vld [vmem:[%s2799_s4 + $0x10] sm:$0xff] }
  0x34   : > { %699 = vmatpush.bf16.msrb.mxu3 %v1653_v21  ;;  %1260 = vmatpush.bf16.msrb.mxu0 %v1785_v1 }
  0x35   : > { %608 = vmatpush.bf16.msra.mxu1 %v1561_v61  ;;  %1809 = vmatpush.bf16.msra.mxu2 %v1561_v61 }
  0x38   : > { %700 = vmatpush.bf16.msrb.mxu3 %v1641_v25  ;;  %v1598_v25 = vld [vmem:[%s2798_s3 + $0x54] sm:$0xf0]  ;;  %1261 = vmatpush.bf16.msrb.mxu0 %v1784_v2 }
  0x39   : > { %650 = vmatpush.bf16.msrb.mxu2 %v1649_v3  ;;  %v1601_v26 = vor.u32 %v1763_v24, %v1598_v25  ;;  %v1783_v3 = vld [vmem:[%s2799_s4 + $0x28] sm:$0xff]  ;;  %1309 = vmatpush.bf16.msrb.mxu1 %v1793_v16 }
  0x3a   : > { %v1791_v25 = vld [vmem:[%s2799_s4 + $0x68] sm:$0xff] }
  0x3c   : > { %701 = vmatpush.bf16.msrb.mxu3 %v1629_v31  ;;  %1262 = vmatpush.bf16.msrb.mxu0 %v1783_v3 }
  0x3d   : > { %651 = vmatpush.bf16.msrb.mxu2 %v1637_v8  ;;  %v1778_v8 = vld [vmem:[%s2799_s4] sm:$0xff] }
  0x40   : > { %702 = vmatpush.bf16.msrb.mxu3 %v1617_v38  ;;  %v1754_v38 = vld [vmem:[%s2798_s3 + $0x4] sm:$0xf] }
  0x41   : > { %v1565_v41 = vor.u32 %v1754_v38, %v1562_v39  ;;  %v1789_v38 = vld [vmem:[%s2799_s4 + $0x58] sm:$0xff] }
  0x43   : > { %397 = vmatmul.bf16.gmra.mxu0 %v1739_v10  ;;  %422 = vmatmul.bf16.gmra.mxu3 %v1744_v11 }
  0x44   : > { %703 = vmatpush.bf16.msrb.mxu3 %v1605_v44 }
  0x48   : > { %704 = vmatpush.bf16.msrb.mxu3 %v1593_v51 }
  0x4c   : > { %705 = vmatpush.bf16.msrb.mxu3 %v1581_v57 }
  0x50   : > { %706 = vmatpush.bf16.msrb.mxu3 %v1569_v63 }
  0x53   : > { %402 = vmatmul.bf16.gmra.mxu0 %v1740_v12  ;;  %427 = vmatmul.bf16.gmra.mxu3 %v1745_v13  ;;  %v1769_v12 = vld [vmem:[%s2798_s3 + $0x7c] sm:$0xf]  ;;  %v1622_v13 = vld [vmem:[%s2798_s3 + $0x84] sm:$0xf0] }
  0x54   : > { %v1625_v14 = vor.u32 %v1769_v12, %v1622_v13 }
  0x56   : > { %652 = vmatpush.bf16.msrb.mxu2 %v1625_v14 }
  0x5a   : > { %653 = vmatpush.bf16.msrb.mxu2 %v1613_v19 }
  0x5e   : > { %654 = vmatpush.bf16.msrb.mxu2 %v1601_v26 }
  0x62   : > { %655 = vmatpush.bf16.msrb.mxu2 %v1589_v30 }
  0x63   : > { %407 = vmatmul.bf16.gmra.mxu0 %v1741_v37 }
  0x66   : > { %656 = vmatpush.bf16.msrb.mxu2 %v1577_v36 }
  0x6a   : > { %657 = vmatpush.bf16.msrb.mxu2 %v1565_v41 }
  0x73   : > { %412 = vmatmul.bf16.gmra.mxu0 %v1742_v45 }
  0xb0   : > { %v393_v0 = vpop.f32.mrf.mxu0 }
  0xb1   : > { %v2213_v9 = vadd.f32 %v2204_v4, %v393_v0 }
  0xb3   : > { %2809 = vst [vmem:[#allocation5_spill] sm:$0xff] %v2213_v9 }
  0xb6   : > { %v418_v7 = vpop.f32.mrf.mxu3 }
  0xb7   : > { %v2233_v20 = vadd.f32 %v2204_v4, %v418_v7  ;;  %v1779_v7 = vld [vmem:[%s2799_s4 + $0x8] sm:$0xff] }
  0xb8   : > { %v395_v10 = vpop.f32.mrf.mxu0 }
  0xb9   : > { %v2216_v11 = vadd.f32 %v2204_v4, %v395_v10 }
  0xbb   : > { %2810 = vst [vmem:[#allocation6_spill] sm:$0xff] %v2216_v11  ;;  %v433_v15 = vpack.c.bf16 %v2216_v11, %v2213_v9 }
  0xbd   : > { %609 = vmatmul.bf16.vlgmr.msra.gmra.mxu1 %v433_v15  ;;  %707 = vmatmul.bf16.vlgmr.msrb.gmra.mxu3 %v433_v15 }
  0xbe   : > { %v420_v18 = vpop.f32.mrf.mxu3 }
  0xbf   : > { %v2236_v21 = vadd.f32 %v2204_v4, %v420_v18 }
  0xc0   : > { %v398_v22 = vpop.f32.mrf.mxu0 }
  0xc1   : > { %v2240_v23 = vpack.c.bf16 %v2236_v21, %v2233_v20  ;;  %v2256_v31 = vadd.f32 %v2204_v4, %v398_v22  ;;  %v1792_v22 = vld [vmem:[%s2799_s4 + $0x70] sm:$0xff] }
  0xc2   : > { %1310 = vmatpush.bf16.msrb.mxu1 %v1792_v22 }
  0xc3   : > { %634 = vmatmul.bf16.vlgmr.msra.gmra.mxu2 %v2240_v23  ;;  %2811 = vst [vmem:[#allocation7_spill] sm:$0xff] %v2256_v31 }
  0xc6   : > { %v423_v29 = vpop.f32.mrf.mxu3  ;;  %1311 = vmatpush.bf16.msrb.mxu1 %v1791_v25 }
  0xc7   : > { %v2276_v42 = vadd.f32 %v2204_v4, %v423_v29  ;;  %v1790_v29 = vld [vmem:[%s2799_s4 + $0x60] sm:$0xff] }
  0xc8   : > { %v400_v32 = vpop.f32.mrf.mxu0 }
  0xc9   : > { %v2259_v33 = vadd.f32 %v2204_v4, %v400_v32 }
  0xca   : > { %1312 = vmatpush.bf16.msrb.mxu1 %v1790_v29 }
  0xcb   : > { %2812 = vst [vmem:[#allocation8_spill] sm:$0xff] %v2259_v33  ;;  %v434_v37 = vpack.c.bf16 %v2259_v33, %v2256_v31 }
  0xcd   : > { %614 = vmatmul.bf16.gmra.mxu1 %v434_v37  ;;  %712 = vmatmul.bf16.gmra.mxu3 %v434_v37 }
  0xce   : > { %v425_v40 = vpop.f32.mrf.mxu3  ;;  %1313 = vmatpush.bf16.msrb.mxu1 %v1789_v38 }
  0xcf   : > { %v2279_v43 = vadd.f32 %v2204_v4, %v425_v40 }
  0xd0   : > { %v403_v44 = vpop.f32.mrf.mxu0 }
  0xd1   : > { %v2283_v45 = vpack.c.bf16 %v2279_v43, %v2276_v42  ;;  %v2287_v47 = vadd.f32 %v2204_v4, %v403_v44  ;;  %v1788_v44 = vld [vmem:[%s2799_s4 + $0x50] sm:$0xff] }
  0xd2   : > { %1314 = vmatpush.bf16.msrb.mxu1 %v1788_v44 }
  0xd3   : > { %639 = vmatmul.bf16.gmra.mxu2 %v2283_v45  ;;  %2813 = vst [vmem:[#allocation9_spill] sm:$0xff] %v2287_v47 }
  0xd6   : > { %v428_v46 = vpop.f32.mrf.mxu3 }
  0xd7   : > { %v2295_v52 = vadd.f32 %v2204_v4, %v428_v46 }
  0xd8   : > { %v405_v48 = vpop.f32.mrf.mxu0 }
  0xd9   : > { %v2290_v49 = vadd.f32 %v2204_v4, %v405_v48 }
  0xdb   : > { %v435_v50 = vpack.c.bf16 %v2290_v49, %v2287_v47 }
  0xdd   : > { %619 = vmatmul.bf16.gmra.mxu1 %v435_v50  ;;  %717 = vmatmul.bf16.gmra.mxu3 %v435_v50 }
  0xde   : > { %v430_v51 = vpop.f32.mrf.mxu3 }
  0xdf   : > { %v2298_v53 = vadd.f32 %v2204_v4, %v430_v51 }
  0xe0   : > { %v408_v54 = vpop.f32.mrf.mxu0 }
  0xe1   : > { %v2302_v55 = vpack.c.bf16 %v2298_v53, %v2295_v52  ;;  %v2306_v56 = vadd.f32 %v2204_v4, %v408_v54 }
  0xe3   : > { %644 = vmatmul.bf16.gmra.mxu2 %v2302_v55 }
  0xe8   : > { %v410_v57 = vpop.f32.mrf.mxu0 }
  0xe9   : > { %v2309_v58 = vadd.f32 %v2204_v4, %v410_v57  ;;  %v1786_v57 = vld [vmem:[%s2799_s4 + $0x40] sm:$0xff] }
  0xeb   : > { %v436_v59 = vpack.c.bf16 %v2309_v58, %v2306_v56 }
  0xed   : > { %624 = vmatmul.bf16.gmra.mxu1 %v436_v59  ;;  %722 = vmatmul.bf16.gmra.mxu3 %v436_v59 }
  0xf0   : > { %v413_v60 = vpop.f32.mrf.mxu0 }
  0xf1   : > { %v2314_v61 = vadd.f32 %v2204_v4, %v413_v60 }
  0xf3   : > { %658 = vmatmul.bf16.vlgmr.msrb.gmra.mxu2 %v433_v15 }
  0xf8   : > { %v415_v62 = vpop.f32.mrf.mxu0 }
  0xf9   : > { %v2317_v63 = vadd.f32 %v2204_v4, %v415_v62  ;;  %v1782_v4 = vld [vmem:[%s2799_s4 + $0x20] sm:$0xff] }
  0xfa   : > { %1263 = vmatpush.bf16.msrb.mxu0 %v1782_v4 }
  0xfb   : > { %v437_v0 = vpack.c.bf16 %v2317_v63, %v2314_v61 }
  0xfd   : > { %629 = vmatmul.bf16.gmra.mxu1 %v437_v0  ;;  %727 = vmatmul.bf16.gmra.mxu3 %v437_v0 }
  0xfe   : > { %1264 = vmatpush.bf16.msrb.mxu0 %v1781_v5 }
 0x102   : > { %1265 = vmatpush.bf16.msrb.mxu0 %v1780_v6 }
 0x103   : > { %663 = vmatmul.bf16.gmra.mxu2 %v434_v37 }
 0x106   : > { %1266 = vmatpush.bf16.msrb.mxu0 %v1779_v7 }
 0x10a   : > { %1267 = vmatpush.bf16.msrb.mxu0 %v1778_v8 }
 0x10d   : > { %732 = vmatmul.bf16.gmra.mxu3 %v2240_v23 }
 0x113   : > { %668 = vmatmul.bf16.gmra.mxu2 %v435_v50 }
 0x11d   : > { %737 = vmatmul.bf16.gmra.mxu3 %v2283_v45 }
 0x123   : > { %673 = vmatmul.bf16.gmra.mxu2 %v436_v59 }
 0x12d   : > { %742 = vmatmul.bf16.gmra.mxu3 %v2302_v55 }
 0x133   : > { %678 = vmatmul.bf16.gmra.mxu2 %v437_v0 }
 0x13a   : > { %v610_v10 = vpop.f32.mrf.mxu1 }
 0x13b   : > { %v1052_v12 = vmax.f32 %v610_v10, 0.0 }
 0x13d   : > { %v1084_v14 = vmul.f32 %v1052_v12, %v1052_v12 }
 0x142   : > { %v612_v13 = vpop.f32.mrf.mxu1 }
 0x143   : > { %v1054_v15 = vmax.f32 %v612_v13, 0.0  ;;  %683 = vmatmul.bf16.gmra.mxu2 %v2240_v23 }
 0x145   : > { %v1086_v17 = vmul.f32 %v1054_v15, %v1054_v15 }
 0x146   : > { %v635_v18 = vpop.f32.mrf.mxu2 }
 0x147   : > { %v1116_v19 = vpack.c.bf16 %v1086_v17, %v1084_v14  ;;  %v1072_v23 = vmax.f32 %v635_v18, 0.0 }
 0x149   : > { %1268 = vmatmul.bf16.vlgmr.msrb.gmra.mxu0 %v1116_v19  ;;  %v2361_v30 = vmul.f32 %v1072_v23, %v1072_v23 }
 0x14a   : > { %v615_v24 = vpop.f32.mrf.mxu1 }
 0x14b   : > { %v1056_v27 = vmax.f32 %v615_v24, 0.0 }
 0x14d   : > { %v1088_v35 = vmul.f32 %v1056_v27, %v1056_v27 }
 0x14e   : > { %v637_v26 = vpop.f32.mrf.mxu2 }
 0x14f   : > { %v1074_v28 = vmax.f32 %v637_v26, 0.0 }
 0x151   : > { %v2363_v32 = vmul.f32 %v1074_v28, %v1074_v28 }
 0x152   : > { %v617_v34 = vpop.f32.mrf.mxu1 }
 0x153   : > { %v1058_v36 = vmax.f32 %v617_v34, 0.0  ;;  %688 = vmatmul.bf16.gmra.mxu2 %v2283_v45  ;;  %v1126_v37 = vpack.c.bf16 %v2363_v32, %v2361_v30  ;;  %v1787_v45 = vld [vmem:[%s2799_s4 + $0x48] sm:$0xff] }
 0x154   : > { %1315 = vmatpush.bf16.msrb.mxu1 %v1787_v45 }
 0x155   : > { %v1090_v39 = vmul.f32 %v1058_v36, %v1058_v36 }
 0x156   : > { %v640_v40 = vpop.f32.mrf.mxu2 }
 0x157   : > { %v1118_v41 = vpack.c.bf16 %v1090_v39, %v1088_v35  ;;  %v1076_v48 = vmax.f32 %v640_v40, 0.0 }
 0x158   : > { %1316 = vmatpush.bf16.msrb.mxu1 %v1786_v57 }
 0x159   : > { %1273 = vmatmul.bf16.gmra.mxu0 %v1118_v41  ;;  %v1108_v59 = vmul.f32 %v1076_v48, %v1076_v48 }
 0x15a   : > { %v620_v46 = vpop.f32.mrf.mxu1 }
 0x15b   : > { %v1060_v51 = vmax.f32 %v620_v46, 0.0 }
 0x15d   : > { %v1092_v0 = vmul.f32 %v1060_v51, %v1060_v51 }
 0x15e   : > { %v642_v50 = vpop.f32.mrf.mxu2 }
 0x15f   : > { %v1078_v54 = vmax.f32 %v642_v50, 0.0 }
 0x161   : > { %v1110_v60 = vmul.f32 %v1078_v54, %v1078_v54 }
 0x162   : > { %v622_v62 = vpop.f32.mrf.mxu1 }
 0x163   : > { %v1062_v1 = vmax.f32 %v622_v62, 0.0  ;;  %693 = vmatmul.bf16.gmra.mxu2 %v2302_v55  ;;  %v1128_v2 = vpack.c.bf16 %v1110_v60, %v1108_v59 }
 0x165   : > { %v1094_v3 = vmul.f32 %v1062_v1, %v1062_v1 }
 0x166   : > { %v645_v4 = vpop.f32.mrf.mxu2 }
 0x167   : > { %v1120_v5 = vpack.c.bf16 %v1094_v3, %v1092_v0  ;;  %v1080_v7 = vmax.f32 %v645_v4, 0.0 }
 0x169   : > { %1278 = vmatmul.bf16.gmra.mxu0 %v1120_v5  ;;  %v1112_v13 = vmul.f32 %v1080_v7, %v1080_v7 }
 0x16a   : > { %v625_v6 = vpop.f32.mrf.mxu1 }
 0x16b   : > { %v1064_v10 = vmax.f32 %v625_v6, 0.0 }
 0x16d   : > { %v1096_v16 = vmul.f32 %v1064_v10, %v1064_v10 }
 0x16e   : > { %v647_v8 = vpop.f32.mrf.mxu2 }
 0x16f   : > { %v1082_v12 = vmax.f32 %v647_v8, 0.0 }
 0x171   : > { %v1114_v14 = vmul.f32 %v1082_v12, %v1082_v12  ;;  %v708_v12 = vpop.f32.mrf.mxu3 }
 0x172   : > { %v627_v15 = vpop.f32.mrf.mxu1 }
 0x173   : > { %v1130_v17 = vpack.c.bf16 %v1114_v14, %v1112_v13  ;;  %v1066_v18 = vmax.f32 %v627_v15, 0.0 }
 0x175   : > { %v1098_v19 = vmul.f32 %v1066_v18, %v1066_v18 }
 0x176   : > { %v659_v22 = vpop.f32.mrf.mxu2 }
 0x177   : > { %v1122_v24 = vpack.c.bf16 %v1098_v19, %v1096_v16  ;;  %v1053_v25 = vmax.f32 %v659_v22, 0.0 }
 0x179   : > { %1283 = vmatmul.bf16.gmra.mxu0 %v1122_v24  ;;  %v1085_v28 = vmul.f32 %v1053_v25, %v1053_v25  ;;  %v710_v14 = vpop.f32.mrf.mxu3 }
 0x17a   : > { %v630_v55 = vpop.f32.mrf.mxu1 }
 0x17b   : > { %v1068_v26 = vmax.f32 %v630_v55, 0.0 }
 0x17d   : > { %v1100_v35 = vmul.f32 %v1068_v26, %v1068_v26 }
 0x17e   : > { %v661_v23 = vpop.f32.mrf.mxu2 }
 0x17f   : > { %v1055_v27 = vmax.f32 %v661_v23, 0.0 }
 0x181   : > { %v1087_v29 = vmul.f32 %v1055_v27, %v1055_v27 }
 0x182   : > { %v632_v34 = vpop.f32.mrf.mxu1 }
 0x183   : > { %v1117_v36 = vpack.c.bf16 %v1087_v29, %v1085_v28  ;;  %v1070_v38 = vmax.f32 %v632_v34, 0.0 }
 0x185   : > { %v1102_v39 = vmul.f32 %v1070_v38, %v1070_v38  ;;  %1317 = vmatmul.bf16.vlgmr.msrb.gmra.mxu1 %v1117_v36  ;;  %v1655_v36 = vmul.f32 -1.442695, %v710_v14 }
 0x186   : > { %v664_v40 = vpop.f32.mrf.mxu2 }
 0x187   : > { %v1124_v41 = vpack.c.bf16 %v1102_v39, %v1100_v35  ;;  %v1057_v44 = vmax.f32 %v664_v40, 0.0 }
 0x189   : > { %1288 = vmatmul.bf16.gmra.mxu0 %v1124_v41  ;;  %v1089_v48 = vmul.f32 %v1057_v44, %v1057_v44 }
 0x18e   : > { %v666_v46 = vpop.f32.mrf.mxu2 }
 0x18f   : > { %v1059_v45 = vmax.f32 %v666_v46, 0.0 }
 0x191   : > { %v1091_v50 = vmul.f32 %v1059_v45, %v1059_v45 }
 0x193   : > { %v1119_v51 = vpack.c.bf16 %v1091_v50, %v1089_v48 }
 0x195   : > { %1322 = vmatmul.bf16.gmra.mxu1 %v1119_v51 }
 0x196   : > { %v669_v54 = vpop.f32.mrf.mxu2 }
 0x197   : > { %v1061_v57 = vmax.f32 %v669_v54, 0.0 }
 0x199   : > { %1293 = vmatmul.bf16.gmra.mxu0 %v1126_v37  ;;  %v1093_v62 = vmul.f32 %v1061_v57, %v1061_v57 }
 0x19e   : > { %v671_v59 = vpop.f32.mrf.mxu2 }
 0x19f   : > { %v1063_v60 = vmax.f32 %v671_v59, 0.0 }
 0x1a1   : > { %v1095_v0 = vmul.f32 %v1063_v60, %v1063_v60 }
 0x1a3   : > { %v1121_v1 = vpack.c.bf16 %v1095_v0, %v1093_v62 }
 0x1a5   : > { %1327 = vmatmul.bf16.gmra.mxu1 %v1121_v1 }
 0x1a6   : > { %v674_v3 = vpop.f32.mrf.mxu2 }
 0x1a7   : > { %v1065_v4 = vmax.f32 %v674_v3, 0.0 }
 0x1a9   : > { %1298 = vmatmul.bf16.gmra.mxu0 %v1128_v2  ;;  %v1097_v7 = vmul.f32 %v1065_v4, %v1065_v4  ;;  %v713_v2 = vpop.f32.mrf.mxu3 }
 0x1aa   : > { %v1656_v50 = vmul.f32 -1.442695, %v713_v2 }
 0x1ae   : > { %v676_v5 = vpop.f32.mrf.mxu2 }
 0x1af   : > { %v1067_v6 = vmax.f32 %v676_v5, 0.0 }
 0x1b1   : > { %v1099_v8 = vmul.f32 %v1067_v6, %v1067_v6  ;;  %v715_v27 = vpop.f32.mrf.mxu3 }
 0x1b2   : > { %v1657_v1 = vmul.f32 -1.442695, %v715_v27 }
 0x1b3   : > { %v1123_v10 = vpack.c.bf16 %v1099_v8, %v1097_v7 }
 0x1b5   : > { %1332 = vmatmul.bf16.gmra.mxu1 %v1123_v10 }
 0x1b6   : > { %v679_v13 = vpop.f32.mrf.mxu2 }
 0x1b7   : > { %v1069_v30 = vmax.f32 %v679_v13, 0.0 }
 0x1b9   : > { %1303 = vmatmul.bf16.gmra.mxu0 %v1130_v17  ;;  %v1101_v15 = vmul.f32 %v1069_v30, %v1069_v30  ;;  %v1654_v17 = vmul.f32 -1.442695, %v708_v12  ;;  %v718_v34 = vpop.f32.mrf.mxu3 }
 0x1bb   : > { %1850 = vpow2.f32 %v1654_v17 }
 0x1bc   : > { %1852 = vpow2.f32 %v1655_v36 }
 0x1be   : > { %v681_v32 = vpop.f32.mrf.mxu2 }
 0x1bf   : > { %v1071_v37 = vmax.f32 %v681_v32, 0.0  ;;  %v1658_v32 = vmul.f32 -1.442695, %v718_v34 }
 0x1c1   : > { %v1103_v16 = vmul.f32 %v1071_v37, %v1071_v37  ;;  %v1851_v39 = vpop.eup %1850  ;;  %v720_v51 = vpop.f32.mrf.mxu3 }
 0x1c2   : > { %v796_v46 = vadd.f32 1.0, %v1851_v39  ;;  %v1853_v54 = vpop.eup %1852 }
 0x1c3   : > { %v1125_v18 = vpack.c.bf16 %v1103_v16, %v1101_v15  ;;  %v2384_v57 = vadd.f32 1.0, %v1853_v54 }
 0x1c4   : > { %1854 = vrcp.f32 %v796_v46  ;;  %vm817_vm0 = vweird.f32 %v796_v46  ;;  %v823_v2 = vand.u32 2147483648, %v796_v46 }
 0x1c5   : > { %1337 = vmatmul.bf16.gmra.mxu1 %v1125_v18  ;;  %1856 = vpow2.f32 %v1656_v50  ;;  %vm832_vm4 = vweird.f32 %v2384_v57 }
 0x1c6   : > { %v684_v19 = vpop.f32.mrf.mxu2  ;;  %v1269_v45 = vpop.f32.mrf.mxu0  ;;  %1858 = vrcp.f32 %v2384_v57  ;;  %v824_v27 = vor.u32 1.1754944e-38, %v823_v2 }
 0x1c7   : > { %v1073_v22 = vmax.f32 %v684_v19, 0.0  ;;  %1860 = vpow2.f32 %v1657_v1 }
 0x1c9   : > { %v1105_v25 = vmul.f32 %v1073_v22, %v1073_v22  ;;  %v723_v8 = vpop.f32.mrf.mxu3 }
 0x1ca   : > { %v1855_v60 = vpop.eup %1854 }
 0x1cb   : > { %v1857_v4 = vpop.eup %1856  ;;  %v813_v7 = vmul.f32 %v1855_v60, %v796_v46  ;;  %vm818_vm1 = vweird.f32 %v1855_v60 }
 0x1cc   : > { %v2389_v12 = vadd.f32 1.0, %v1857_v4  ;;  %v1859_v30 = vpop.eup %1858  ;;  %vm2399_vm2 = vmor %vm817_vm0, %vm818_vm1 }
 0x1cd   : > { %v814_v13 = vsub.f32 1.0, %v813_v7  ;;  %v1861_v14 = vpop.eup %1860  ;;  %v828_v16 = vmul.f32 %v1859_v30, %v2384_v57  ;;  %vm833_vm5 = vweird.f32 %v1859_v30 }
 0x1ce   : > { %v686_v24 = vpop.f32.mrf.mxu2  ;;  %v2386_v62 = vpop.f32.mrf.mxu0  ;;  %1862 = vrcp.f32 %v2389_v12  ;;  %v2395_v18 = vadd.f32 1.0, %v1861_v14  ;;  %vm2419_vm6 = vmor %vm832_vm4, %vm833_vm5  ;;  %vm847_vm8 = vweird.f32 %v2389_v12 }
 0x1cf   : > { %v1075_v55 = vmax.f32 %v686_v24, 0.0  ;;  %v815_v15 = vmul.f32 %v1855_v60, %v814_v13  ;;  %1864 = vpow2.f32 %v1658_v32  ;;  %v821_v24 = vand.u32 2147483647, %v796_v46 }
 0x1d0   : > { %1866 = vrcp.f32 %v2395_v18  ;;  %v851_v32 = vand.u32 2147483647, %v2389_v12  ;;  %vm862_vm12 = vweird.f32 %v2395_v18 }
 0x1d1   : > { %v1107_v23 = vmul.f32 %v1075_v55, %v1075_v55  ;;  %v725_v19 = vpop.f32.mrf.mxu3  ;;  %v816_v22 = vadd.f32 %v1855_v60, %v815_v15  ;;  %v829_v55 = vsub.f32 1.0, %v828_v16  ;;  %vm822_vm3 = vcmp.eq.f32.partialorder %v821_v24, 8.507059e+37 }
 0x1d2   : > { %v1661_v16 = vmul.f32 -1.442695, %v725_v19  ;;  %vm852_vm11 = vcmp.eq.f32.partialorder %v851_v32, 8.507059e+37 }
 0x1d3   : > { %v1127_v26 = vpack.c.bf16 %v1107_v23, %v1105_v25  ;;  %v820_v17 = vsel %vm2399_vm2, %v1855_v60, %v816_v22 }
 0x1d4   : > { %v2397_v25 = vpop.eup %1862 }
 0x1d5   : > { %1342 = vmatmul.bf16.gmra.mxu1 %v1127_v26  ;;  %v1659_v26 = vmul.f32 -1.442695, %v720_v51  ;;  %v843_v34 = vmul.f32 %v2397_v25, %v2389_v12  ;;  %vm848_vm9 = vweird.f32 %v2397_v25 }
 0x1d6   : > { %v689_v28 = vpop.f32.mrf.mxu2  ;;  %v2392_v37 = vpop.f32.mrf.mxu0  ;;  %vm2443_vm10 = vmor %vm847_vm8, %vm848_vm9 }
 0x1d7   : > { %v1077_v29 = vmax.f32 %v689_v28, 0.0  ;;  %v1865_v28 = vpop.eup %1864  ;;  %1868 = vpow2.f32 %v1659_v26  ;;  %v844_v50 = vsub.f32 1.0, %v843_v34  ;;  %v866_v34 = vand.u32 2147483647, %v2395_v18 }
 0x1d8   : > { %v2411_v39 = vadd.f32 1.0, %v1865_v28  ;;  %v2417_v51 = vpop.eup %1866 }
 0x1d9   : > { %v1109_v40 = vmul.f32 %v1077_v29, %v1077_v29  ;;  %v830_v29 = vmul.f32 %v1859_v30, %v829_v55  ;;  %v728_v54 = vpop.f32.mrf.mxu3  ;;  %vm863_vm13 = vweird.f32 %v2417_v51  ;;  %vm867_vm15 = vcmp.eq.f32.partialorder %v866_v34, 8.507059e+37 }
 0x1da   : > { %1870 = vrcp.f32 %v2411_v39  ;;  %vm2466_vm14 = vmor %vm862_vm12, %vm863_vm13  ;;  %vm877_vm0 = vweird.f32 %v2411_v39 }
 0x1db   : > { %v831_v46 = vadd.f32 %v1859_v30, %v830_v29 }
 0x1dd   : > { %v835_v1 = vsel %vm2419_vm6, %v1859_v30, %v831_v46 }
 0x1de   : > { %v691_v35 = vpop.f32.mrf.mxu2 }
 0x1df   : > { %v1079_v38 = vmax.f32 %v691_v35, 0.0  ;;  %v2408_v35 = vpop.f32.mrf.mxu0 }
 0x1e1   : > { %v1111_v41 = vmul.f32 %v1079_v38, %v1079_v38  ;;  %v2448_v2 = vpop.f32.mrf.mxu3 }
 0x1e3   : > { %v1129_v44 = vpack.c.bf16 %v1111_v41, %v1109_v40  ;;  %v825_v40 = vsel %vm822_vm3, %v824_v27, %v820_v17  ;;  %v838_v41 = vand.u32 2147483648, %v2384_v57  ;;  %v868_v17 = vand.u32 2147483648, %v2395_v18 }
 0x1e5   : > { %1347 = vmatmul.bf16.gmra.mxu1 %v1129_v44  ;;  %v839_v60 = vor.u32 1.1754944e-38, %v838_v41  ;;  %v1662_v41 = vmul.f32 -1.442695, %v728_v54  ;;  %v869_v46 = vor.u32 1.1754944e-38, %v868_v17 }
 0x1e6   : > { %v694_v48 = vpop.f32.mrf.mxu2 }
 0x1e7   : > { %v1081_v59 = vmax.f32 %v694_v48, 0.0  ;;  %v836_v48 = vand.u32 2147483647, %v2384_v57  ;;  %v858_v57 = vmul.f32 %v2417_v51, %v2395_v18  ;;  %v2434_v7 = vpop.f32.mrf.mxu0 }
 0x1e9   : > { %v1113_v5 = vmul.f32 %v1081_v59, %v1081_v59  ;;  %vm837_vm7 = vcmp.eq.f32.partialorder %v836_v48, 8.507059e+37  ;;  %v859_v14 = vsub.f32 1.0, %v858_v57 }
 0x1ee   : > { %v696_v0 = vpop.f32.mrf.mxu2 }
 0x1ef   : > { %v1083_v3 = vmax.f32 %v696_v0, 0.0  ;;  %v1869_v0 = vpop.eup %1868 }
 0x1f0   : > { %v2441_v15 = vpop.eup %1870 }
 0x1f1   : > { %v1115_v6 = vmul.f32 %v1083_v3, %v1083_v3  ;;  %v845_v3 = vmul.f32 %v2397_v25, %v844_v50  ;;  %v873_v23 = vmul.f32 %v2441_v15, %v2411_v39  ;;  %vm878_vm1 = vweird.f32 %v2441_v15 }
 0x1f2   : > { %vm2488_vm2 = vmor %vm877_vm0, %vm878_vm1 }
 0x1f3   : > { %v1131_v10 = vpack.c.bf16 %v1115_v6, %v1113_v5  ;;  %v2432_v6 = vadd.f32 1.0, %v1869_v0  ;;  %v846_v30 = vadd.f32 %v2397_v25, %v845_v3 }
 0x1f5   : > { %1352 = vmatmul.bf16.gmra.mxu1 %v1131_v10  ;;  %v853_v10 = vand.u32 2147483648, %v2389_v12  ;;  %v850_v55 = vsel %vm2443_vm10, %v2397_v25, %v846_v30  ;;  %v860_v12 = vmul.f32 %v2417_v51, %v859_v14  ;;  %vm892_vm4 = vweird.f32 %v2432_v6 }
 0x1f7   : > { %v854_v22 = vor.u32 1.1754944e-38, %v853_v10  ;;  %v861_v29 = vadd.f32 %v2417_v51, %v860_v12 }
 0x1f9   : > { %v855_v28 = vsel %vm852_vm11, %v854_v22, %v850_v55  ;;  %v865_v50 = vsel %vm2466_vm14, %v2417_v51, %v861_v29  ;;  %v883_v51 = vand.u32 2147483648, %v2411_v39 }
 0x1fb   : > { %v884_v30 = vor.u32 1.1754944e-38, %v883_v51 }
 0x202   : > { %v1318_v36 = vpop.f32.mrf.mxu1 }
 0x203   : > { %v1319_v38 = vadd.f32 %v1318_v36, %v1269_v45  ;;  %v1660_v45 = vmul.f32 -1.442695, %v723_v8  ;;  %v840_v8 = vsel %vm837_vm7, %v839_v60, %v835_v1  ;;  %v874_v36 = vsub.f32 1.0, %v873_v23 }
 0x204   : > { %v870_v1 = vsel %vm867_vm15, %v869_v46, %v865_v50  ;;  %v898_v23 = vand.u32 2147483648, %v2432_v6 }
 0x205   : > { %v2414_v44 = vmul.f32 %v1319_v38, %v825_v40  ;;  %1872 = vpow2.f32 %v1660_v45  ;;  %v1281_v40 = vpop.f32.mrf.mxu0  ;;  %v875_v59 = vmul.f32 %v2441_v15, %v874_v36  ;;  %v2476_v45 = vpop.f32.mrf.mxu3 }
 0x206   : > { %1874 = vrcp.f32 %v2432_v6 }
 0x207   : > { %2816 = vst [vmem:[#allocation10_spill] sm:$0xff] %v2414_v44  ;;  %1876 = vpow2.f32 %v1661_v16  ;;  %v876_v57 = vadd.f32 %v2441_v15, %v875_v59 }
 0x209   : > { %v880_v14 = vsel %vm2488_vm2, %v2441_v15, %v876_v57 }
 0x20a   : > { %v1320_v4 = vpop.f32.mrf.mxu1 }
 0x20b   : > { %v1321_v5 = vadd.f32 %v1320_v4, %v2386_v62  ;;  %v1873_v24 = vpop.eup %1872  ;;  %v881_v4 = vand.u32 2147483647, %v2411_v39 }
 0x20c   : > { %v2459_v27 = vadd.f32 1.0, %v1873_v24  ;;  %v1875_v38 = vpop.eup %1874 }
 0x20d   : > { %v2437_v13 = vmul.f32 %v1321_v5, %v840_v8  ;;  %v1877_v48 = vpop.eup %1876  ;;  %v888_v18 = vmul.f32 %v1875_v38, %v2432_v6  ;;  %vm882_vm3 = vcmp.eq.f32.partialorder %v881_v4, 8.507059e+37  ;;  %vm893_vm5 = vweird.f32 %v1875_v38  ;;  %v2501_v55 = vpop.f32.mrf.mxu3 }
 0x20e   : > { %1878 = vrcp.f32 %v2459_v27  ;;  %v2481_v54 = vadd.f32 1.0, %v1877_v48  ;;  %v885_v12 = vsel %vm882_vm3, %v884_v30, %v880_v14  ;;  %vm894_vm6 = vmor %vm892_vm4, %vm893_vm5  ;;  %vm907_vm8 = vweird.f32 %v2459_v27 }
 0x20f   : > { %2819 = vst [vmem:[#allocation11_spill] sm:$0xff] %v2437_v13  ;;  %1880 = vpow2.f32 %v1662_v41  ;;  %v889_v5 = vsub.f32 1.0, %v888_v18  ;;  %v911_v18 = vand.u32 2147483647, %v2459_v27 }
 0x210   : > { %1882 = vrcp.f32 %v2481_v54  ;;  %vm922_vm12 = vweird.f32 %v2481_v54 }
 0x211   : > { %v890_v62 = vmul.f32 %v1875_v38, %v889_v5  ;;  %vm912_vm11 = vcmp.eq.f32.partialorder %v911_v18, 8.507059e+37 }
 0x212   : > { %v1323_v26 = vpop.f32.mrf.mxu1 }
 0x213   : > { %v1324_v19 = vadd.f32 %v1323_v26, %v2392_v37  ;;  %v891_v15 = vadd.f32 %v1875_v38, %v890_v62  ;;  %v926_v62 = vand.u32 2147483647, %v2481_v54 }
 0x214   : > { %v1879_v8 = vpop.eup %1878 }
 0x215   : > { %v2462_v25 = vmul.f32 %v1324_v19, %v855_v28  ;;  %v1881_v32 = vpop.eup %1880  ;;  %v903_v16 = vmul.f32 %v1879_v8, %v2459_v27  ;;  %v896_v19 = vand.u32 2147483647, %v2432_v6  ;;  %v895_v29 = vsel %vm894_vm6, %v1875_v38, %v891_v15 }
 0x216   : > { %v2499_v24 = vadd.f32 1.0, %v1881_v32  ;;  %v1883_v17 = vpop.eup %1882  ;;  %vm908_vm9 = vweird.f32 %v1879_v8  ;;  %v913_v6 = vand.u32 2147483648, %v2459_v27  ;;  %v928_v32 = vand.u32 2147483648, %v2481_v54 }
 0x217   : > { %2822 = vst [vmem:[#allocation12_spill] sm:$0xff] %v2462_v25  ;;  %v904_v28 = vsub.f32 1.0, %v903_v16  ;;  %vm897_vm7 = vcmp.eq.f32.partialorder %v896_v19, 8.507059e+37  ;;  %v918_v36 = vmul.f32 %v1883_v17, %v2481_v54  ;;  %vm909_vm10 = vmor %vm907_vm8, %vm908_vm9  ;;  %vm923_vm13 = vweird.f32 %v1883_v17 }
 0x218   : > { %1884 = vrcp.f32 %v2499_v24  ;;  %vm924_vm14 = vmor %vm922_vm12, %vm923_vm13  ;;  %vm927_vm15 = vcmp.eq.f32.partialorder %v926_v62, 8.507059e+37  ;;  %vm937_vm0 = vweird.f32 %v2499_v24  ;;  %v943_v19 = vand.u32 2147483648, %v2499_v24 }
 0x219   : > { %v905_v34 = vmul.f32 %v1879_v8, %v904_v28  ;;  %v941_v54 = vand.u32 2147483647, %v2499_v24 }
 0x21a   : > { %v1325_v60 = vpop.f32.mrf.mxu1 }
 0x21b   : > { %v1326_v0 = vadd.f32 %v1325_v60, %v2408_v35  ;;  %v1284_v35 = vpop.f32.mrf.mxu0  ;;  %v906_v59 = vadd.f32 %v1879_v8, %v905_v34  ;;  %v919_v60 = vsub.f32 1.0, %v918_v36  ;;  %v944_v34 = vor.u32 1.1754944e-38, %v943_v19 }
 0x21c   : > { %vm942_vm3 = vcmp.eq.f32.partialorder %v941_v54, 8.507059e+37 }
 0x21d   : > { %v2484_v3 = vmul.f32 %v1326_v0, %v870_v1  ;;  %v738_v0 = vpop.f32.mrf.mxu3  ;;  %v914_v1 = vor.u32 1.1754944e-38, %v913_v6  ;;  %v910_v51 = vsel %vm909_vm10, %v1879_v8, %v906_v59  ;;  %v920_v57 = vmul.f32 %v1883_v17, %v919_v60 }
 0x21e   : > { %v1885_v38 = vpop.eup %1884  ;;  %v1664_v60 = vmul.f32 -1.442695, %v2476_v45 }
 0x21f   : > { %2825 = vst [vmem:[#allocation13_spill] sm:$0xff] %v2484_v3  ;;  %v915_v30 = vsel %vm912_vm11, %v914_v1, %v910_v51  ;;  %v921_v14 = vadd.f32 %v1883_v17, %v920_v57  ;;  %vm938_vm1 = vweird.f32 %v1885_v38  ;;  %v1663_v51 = vmul.f32 -1.442695, %v2448_v2 }
 0x220   : > { %vm939_vm2 = vmor %vm937_vm0, %vm938_vm1  ;;  %1886 = vpow2.f32 %v1664_v60  ;;  %v1665_v57 = vmul.f32 -1.442695, %v2501_v55 }
 0x222   : > { %v1328_v39 = vpop.f32.mrf.mxu1 }
 0x223   : > { %v1329_v22 = vadd.f32 %v1328_v39, %v2434_v7  ;;  %v899_v7 = vor.u32 1.1754944e-38, %v898_v23  ;;  %v1286_v37 = vpop.f32.mrf.mxu0  ;;  %v929_v39 = vor.u32 1.1754944e-38, %v928_v32 }
 0x225   : > { %v2504_v26 = vmul.f32 %v1329_v22, %v885_v12  ;;  %v900_v48 = vsel %vm897_vm7, %v899_v7, %v895_v29  ;;  %v740_v8 = vpop.f32.mrf.mxu3  ;;  %v925_v22 = vsel %vm924_vm14, %v1883_v17, %v921_v14 }
 0x226   : > { %v930_v15 = vsel %vm927_vm15, %v929_v39, %v925_v22 }
 0x227   : > { %2828 = vst [vmem:[#allocation14_spill] sm:$0xff] %v2504_v26 }
 0x22a   : > { %v1330_v41 = vpop.f32.mrf.mxu1 }
 0x22b   : > { %v1331_v46 = vadd.f32 %v1330_v41, %v1281_v40  ;;  %v933_v40 = vmul.f32 %v1885_v38, %v2499_v24  ;;  %v1289_v10 = vpop.f32.mrf.mxu0 }
 0x22d   : > { %v2511_v50 = vmul.f32 %v1331_v46, %v900_v48  ;;  %v934_v16 = vsub.f32 1.0, %v933_v40  ;;  %v743_v36 = vpop.f32.mrf.mxu3 }
 0x22e   : > { %v1668_v24 = vmul.f32 -1.442695, %v743_v36 }
 0x22f   : > { %v935_v12 = vmul.f32 %v1885_v38, %v934_v16 }
 0x230   : > { %1888 = vpow2.f32 %v1668_v24 }
 0x231   : > { %v936_v7 = vadd.f32 %v1885_v38, %v935_v12 }
 0x232   : > { %v1333_v4 = vpop.f32.mrf.mxu1 }
 0x233   : > { %v1334_v5 = vadd.f32 %v1333_v4, %v1284_v35  ;;  %v2525_v29 = vpop.f32.mrf.mxu0  ;;  %v940_v17 = vsel %vm939_vm2, %v1885_v38, %v936_v7  ;;  %v1667_v38 = vmul.f32 -1.442695, %v740_v8 }
 0x234   : > { %v945_v46 = vsel %vm942_vm3, %v944_v34, %v940_v17 }
 0x235   : > { %v2517_v27 = vmul.f32 %v1334_v5, %v915_v30  ;;  %v745_v18 = vpop.f32.mrf.mxu3  ;;  %v1666_v5 = vmul.f32 -1.442695, %v738_v0 }
 0x236   : > { %v1669_v1 = vmul.f32 -1.442695, %v745_v18 }
 0x238   : > { %1890 = vpow2.f32 %v1669_v1 }
 0x239   : > { %1892 = vpow2.f32 %v1663_v51 }
 0x23a   : > { %v1335_v35 = vpop.f32.mrf.mxu1  ;;  %1894 = vpow2.f32 %v1667_v38 }
 0x23b   : > { %v1336_v23 = vadd.f32 %v1335_v35, %v1286_v37  ;;  %v2529_v6 = vpop.f32.mrf.mxu0  ;;  %1896 = vpow2.f32 %v1665_v57 }
 0x23c   : > { %1898 = vpow2.f32 %v1666_v5 }
 0x23d   : > { %v2522_v28 = vmul.f32 %v1336_v23, %v930_v15 }
 0x242   : > { %v1338_v41 = vpop.f32.mrf.mxu1 }
 0x243   : > { %v1339_v37 = vadd.f32 %v1338_v41, %v1289_v10  ;;  %v2536_v40 = vpop.f32.mrf.mxu0  ;;  %v1887_v10 = vpop.eup %1886 }
 0x244   : > { %v1889_v45 = vpop.eup %1888  ;;  %v2540_v2 = vadd.f32 1.0, %v1887_v10 }
 0x245   : > { %v2527_v48 = vmul.f32 %v1339_v37, %v945_v46  ;;  %v1891_v30 = vpop.eup %1890  ;;  %v2544_v62 = vadd.f32 1.0, %v1889_v45 }
 0x246   : > { %v1893_v32 = vpop.eup %1892  ;;  %v2546_v8 = vadd.f32 1.0, %v1891_v30  ;;  %1900 = vrcp.f32 %v2540_v2  ;;  %vm967_vm13 = vweird.f32 %v2540_v2 }
 0x247   : > { %v1895_v55 = vpop.eup %1894  ;;  %v2550_v22 = vadd.f32 1.0, %v1893_v32  ;;  %1902 = vrcp.f32 %v2544_v62  ;;  %vm1027_vm12 = vweird.f32 %v2544_v62 }
 0x248   : > { %v1897_v16 = vpop.eup %1896  ;;  %v2553_v12 = vadd.f32 1.0, %v1895_v55  ;;  %1904 = vrcp.f32 %v2546_v8  ;;  %v1048_v9 = vand.u32 2147483648, %v2546_v8  ;;  %vm1042_vm0 = vweird.f32 %v2546_v8 }
 0x249   : > { %v1899_v39 = vpop.eup %1898  ;;  %v2555_v35 = vadd.f32 1.0, %v1897_v16  ;;  %1906 = vrcp.f32 %v2550_v22  ;;  %vm952_vm6 = vweird.f32 %v2550_v22 }
 0x24a   : > { %v2531_v59 = vpop.f32.mrf.mxu1  ;;  %v2558_v23 = vadd.f32 1.0, %v1899_v39  ;;  %1908 = vrcp.f32 %v2553_v12  ;;  %vm1012_vm2 = vweird.f32 %v2553_v12  ;;  %v1049_v26 = vor.u32 1.1754944e-38, %v1048_v9 }
 0x24b   : > { %v2548_v0 = vpop.f32.mrf.mxu0  ;;  %1910 = vrcp.f32 %v2555_v35  ;;  %vm982_vm10 = vweird.f32 %v2555_v35 }
 0x24c   : > { %v2566_v19 = vpop.eup %1900  ;;  %1912 = vrcp.f32 %v2558_v23  ;;  %vm997_vm5 = vweird.f32 %v2558_v23 }
 0x24d   : > { %v2569_v7 = vpop.eup %1902  ;;  %v963_v36 = vmul.f32 %v2566_v19, %v2540_v2  ;;  %vm968_vm9 = vweird.f32 %v2566_v19 }
 0x24e   : > { %v2571_v54 = vpop.eup %1904  ;;  %v1023_v18 = vmul.f32 %v2569_v7, %v2544_v62  ;;  %vm1028_vm8 = vweird.f32 %v2569_v7 }
 0x24f   : > { %v2575_v17 = vpop.eup %1906  ;;  %v1038_v46 = vmul.f32 %v2571_v54, %v2546_v8  ;;  %v964_v51 = vsub.f32 1.0, %v963_v36  ;;  %vm1043_vm11 = vweird.f32 %v2571_v54  ;;  %vm2634_vm15 = vmor %vm1027_vm12, %vm1028_vm8 }
 0x250   : > { %v2579_v41 = vpop.eup %1908  ;;  %v948_v24 = vmul.f32 %v2575_v17, %v2550_v22  ;;  %v1024_v10 = vsub.f32 1.0, %v1023_v18  ;;  %vm953_vm7 = vweird.f32 %v2575_v17  ;;  %vm2646_vm3 = vmor %vm1042_vm0, %vm1043_vm11 }
 0x251   : > { %v2581_v37 = vpop.eup %1910  ;;  %v1008_v38 = vmul.f32 %v2579_v41, %v2553_v12  ;;  %v1039_v45 = vsub.f32 1.0, %v1038_v46  ;;  %v965_v32 = vmul.f32 %v2566_v19, %v964_v51  ;;  %v1033_v46 = vand.u32 2147483648, %v2544_v62 }
 0x252   : > { %v2538_v4 = vpop.f32.mrf.mxu1  ;;  %v2587_v60 = vpop.eup %1912  ;;  %v978_v57 = vmul.f32 %v2581_v37, %v2555_v35  ;;  %v949_v30 = vsub.f32 1.0, %v948_v24  ;;  %v1025_v11 = vmul.f32 %v2569_v7, %v1024_v10  ;;  %vm983_vm4 = vweird.f32 %v2581_v37 }
 0x253   : > { %v2573_v34 = vpop.f32.mrf.mxu0  ;;  %v993_v5 = vmul.f32 %v2587_v60, %v2558_v23  ;;  %v1009_v55 = vsub.f32 1.0, %v1008_v38  ;;  %v1040_v25 = vmul.f32 %v2571_v54, %v1039_v45  ;;  %v2610_v39 = vadd.f32 %v2566_v19, %v965_v32 }
 0x254   : > { %v979_v44 = vsub.f32 1.0, %v978_v57  ;;  %v950_v18 = vmul.f32 %v2575_v17, %v949_v30  ;;  %v1001_v10 = vand.u32 2147483647, %v2558_v23  ;;  %v1003_v45 = vand.u32 2147483648, %v2558_v23 }
 0x255   : > { %v994_v13 = vsub.f32 1.0, %v993_v5  ;;  %v1010_v57 = vmul.f32 %v2579_v41, %v1009_v55  ;;  %v1026_v32 = vadd.f32 %v2569_v7, %v1025_v11  ;;  %v1041_v55 = vadd.f32 %v2571_v54, %v1040_v25 }
 0x256   : > { %v980_v5 = vmul.f32 %v2581_v37, %v979_v44  ;;  %v1031_v44 = vand.u32 2147483647, %v2544_v62  ;;  %vm1013_vm14 = vweird.f32 %v2579_v41  ;;  %vm998_vm1 = vweird.f32 %v2587_v60 }
 0x257   : > { %v995_v30 = vmul.f32 %v2587_v60, %v994_v13  ;;  %v1011_v51 = vadd.f32 %v2579_v41, %v1010_v57  ;;  %v1046_v13 = vand.u32 2147483647, %v2546_v8  ;;  %v1016_v25 = vand.u32 2147483647, %v2553_v12  ;;  %vm2660_vm8 = vmor %vm1012_vm2, %vm1013_vm14 }
 0x258   : > { %v1018_v62 = vand.u32 2147483648, %v2553_v12  ;;  %v1030_v8 = vsel %vm2634_vm15, %v2569_v7, %v1026_v32  ;;  %v1045_v31 = vsel %vm2646_vm3, %v2571_v54, %v1041_v55  ;;  %v981_v12 = vadd.f32 %v2581_v37, %v980_v5  ;;  %vm2673_vm14 = vmor %vm997_vm5, %vm998_vm1 }
 0x259   : > { %v996_v24 = vadd.f32 %v2587_v60, %v995_v30  ;;  %vm1032_vm11 = vcmp.eq.f32.partialorder %v1031_v44, 8.507059e+37  ;;  %v1034_v30 = vor.u32 1.1754944e-38, %v1033_v46  ;;  %v1015_v7 = vsel %vm2660_vm8, %v2579_v41, %v1011_v51  ;;  %vm2687_vm5 = vmor %vm982_vm10, %vm983_vm4 }
 0x25a   : > { %v2542_v14 = vpop.f32.mrf.mxu1  ;;  %vm1047_vm12 = vcmp.eq.f32.partialorder %v1046_v13, 8.507059e+37  ;;  %vm1017_vm15 = vcmp.eq.f32.partialorder %v1016_v25, 8.507059e+37  ;;  %v1019_v9 = vor.u32 1.1754944e-38, %v1018_v62  ;;  %v951_v41 = vadd.f32 %v2575_v17, %v950_v18  ;;  %vm2695_vm1 = vmor %vm952_vm6, %vm953_vm7 }
 0x25b   : > { %v1304_v16 = vpop.f32.mrf.mxu0  ;;  %v1035_v46 = vsel %vm1032_vm11, %v1034_v30, %v1030_v8  ;;  %v1050_v5 = vsel %vm1047_vm12, %v1049_v26, %v1045_v31  ;;  %v1000_v33 = vsel %vm2673_vm14, %v2587_v60, %v996_v24  ;;  %vm1002_vm0 = vcmp.eq.f32.partialorder %v1001_v10, 8.507059e+37  ;;  %vm2711_vm4 = vmor %vm967_vm13, %vm968_vm9 }
 0x25c   : > { %v1004_v31 = vor.u32 1.1754944e-38, %v1003_v45  ;;  %v1020_v26 = vsel %vm1017_vm15, %v1019_v9, %v1015_v7  ;;  %v1346_v60 = vadd.f32 %v2542_v14, %v2536_v40  ;;  %v2841_v18 = vand.u32 2147483648, %v2550_v22 }
 0x25d   : > { %v2844_v10 = vand.u32 2147483647, %v2555_v35  ;;  %v1344_v45 = vadd.f32 %v2538_v4, %v2529_v6  ;;  %v2846_v44 = vand.u32 2147483647, %v2550_v22  ;;  %v2847_v11 = vand.u32 2147483647, %v2540_v2 }
 0x25e   : > { %v959_v24 = vor.u32 1.1754944e-38, %v2841_v18  ;;  %v1005_v14 = vsel %vm1002_vm0, %v1004_v31, %v1000_v33  ;;  %v1341_v6 = vadd.f32 %v2531_v59, %v2525_v29  ;;  %v1381_v59 = vadd.f32 %v2522_v28, %v2309_v58  ;;  %v2853_v58 = vld [vmem:[#allocation7_spill] sm:$0xff]  ;;  %v2854_v28 = vld [vmem:[#allocation12_spill] sm:$0xff] }
 0x25f   : > { %vm987_vm6 = vcmp.eq.f32.partialorder %v2844_v10, 8.507059e+37  ;;  %vm957_vm7 = vcmp.eq.f32.partialorder %v2846_v44, 8.507059e+37  ;;  %vm972_vm9 = vcmp.eq.f32.partialorder %v2847_v11, 8.507059e+37  ;;  %v1376_v7 = vadd.f32 %v2854_v28, %v2853_v58 }
 0x262   : > { %v2563_v15 = vpop.f32.mrf.mxu1 }
 0x263   : > { %v1306_v3 = vpop.f32.mrf.mxu0 }
 0x26a   : > { %v2591_v1 = vpop.f32.mrf.mxu1 }
 0x26b   : > { %v1351_v54 = vadd.f32 %v2591_v1, %v2573_v34  ;;  %v1349_v34 = vadd.f32 %v2563_v15, %v2548_v0  ;;  %v985_v15 = vsel %vm2687_vm5, %v2581_v37, %v981_v12  ;;  %v2845_v37 = vand.u32 2147483648, %v2555_v35 }
 0x26c   : > { %v2848_v35 = vand.u32 2147483648, %v2540_v2 }
 0x26d   : > { %v1371_v1 = vmul.f32 %v1351_v54, %v1020_v26  ;;  %v989_v40 = vor.u32 1.1754944e-38, %v2845_v37  ;;  %v1370_v32 = vmul.f32 %v1349_v34, %v1005_v14 }
 0x26e   : > { %v974_v13 = vor.u32 1.1754944e-38, %v2848_v35 }
 0x26f   : > { %v990_v25 = vsel %vm987_vm6, %v989_v40, %v985_v15  ;;  %v1386_v62 = vadd.f32 %v1370_v32, %v2276_v42  ;;  %v1380_v42 = vadd.f32 %v2517_v27, %v2306_v56  ;;  %v2855_v56 = vld [vmem:[#allocation6_spill] sm:$0xff]  ;;  %v2856_v27 = vld [vmem:[#allocation11_spill] sm:$0xff] }
 0x270   : > { %v1369_v4 = vmul.f32 %v1346_v60, %v990_v25  ;;  %v1375_v54 = vadd.f32 %v2856_v27, %v2855_v56 }
 0x272   : > { %v1353_v38 = vpop.f32.mrf.mxu1  ;;  %v1385_v8 = vadd.f32 %v1369_v4, %v2236_v21  ;;  %v2849_v21 = vld [vmem:[#allocation9_spill] sm:$0xff] }
 0x273   : > { %v1354_v36 = vadd.f32 %v1353_v38, %v1304_v16  ;;  %v1390_v38 = vld [vmem:[%s2800_s5] sm:$0xff] }
 0x27a   : > { %v1355_v47 = vpop.f32.mrf.mxu1 }
 0x27b   : > { %v1356_v16 = vadd.f32 %v1355_v47, %v1306_v3  ;;  %v1372_v47 = vmul.f32 %v1354_v36, %v1035_v46 }
 0x27d   : > { %v1373_v3 = vmul.f32 %v1356_v16, %v1050_v5  ;;  %v1388_v55 = vadd.f32 %v1372_v47, %v2295_v52  ;;  %v1387_v52 = vadd.f32 %v1371_v1, %v2279_v43  ;;  %v1382_v43 = vadd.f32 %v2527_v48, %v2314_v61  ;;  %v2851_v61 = vld [vmem:[#allocation8_spill] sm:$0xff]  ;;  %v2852_v48 = vld [vmem:[#allocation13_spill] sm:$0xff] }
 0x27e   : > { %v1377_v30 = vadd.f32 %v2852_v48, %v2851_v61  ;;  %v2857_v16 = vld [vmem:[#allocation5_spill] sm:$0xff] }
 0x27f   : > { %v1389_v36 = vadd.f32 %v1373_v3, %v2298_v53  ;;  %v970_v53 = vsel %vm2711_vm4, %v2566_v19, %v2610_v39  ;;  %v955_v19 = vsel %vm2695_vm1, %v2575_v17, %v951_v41 }
 0x280   : > { %v975_v22 = vsel %vm972_vm9, %v974_v13, %v970_v53  ;;  %v960_v57 = vsel %vm957_vm7, %v959_v24, %v955_v19 }
 0x281   : > { %1391 = vmatpush.msra.mxu2 %v1389_v36  ;;  %v1368_v39 = vmul.f32 %v1344_v45, %v975_v22  ;;  %v1367_v2 = vmul.f32 %v1341_v6, %v960_v57 }
 0x283   : > { %1392 = vmatpush.msra.mxu2 %v1388_v55  ;;  %v1384_v17 = vadd.f32 %v1368_v39, %v2233_v20  ;;  %v1383_v29 = vadd.f32 %v1367_v2, %v2317_v63  ;;  %v1379_v20 = vadd.f32 %v2511_v50, %v2290_v49  ;;  %v2850_v63 = vld [vmem:[#allocation14_spill] sm:$0xff] }
 0x284   : > { %v1378_v12 = vadd.f32 %v2850_v63, %v2849_v21  ;;  %v2858_v49 = vld [vmem:[#allocation10_spill] sm:$0xff] }
 0x285   : > { %1393 = vmatpush.msra.mxu2 %v1387_v52  ;;  %v1374_v50 = vadd.f32 %v2858_v49, %v2857_v16 }
 0x287   : > { %1394 = vmatpush.msra.mxu2 %v1386_v62 }
 0x289   : > { %1395 = vmatpush.msra.mxu2 %v1385_v8 }
 0x28b   : > { %1396 = vmatpush.msra.mxu2 %v1384_v17 }
 0x28d   : > { %1397 = vmatpush.msra.mxu2 %v1383_v29 }
 0x28f   : > { %1398 = vmatpush.msra.mxu2 %v1382_v43 }
 0x291   : > { %1399 = vmatpush.msra.mxu2 %v1381_v59 }
 0x293   : > { %1400 = vmatpush.msra.mxu2 %v1380_v42 }
 0x295   : > { %1401 = vmatpush.msra.mxu2 %v1379_v20 }
 0x297   : > { %1402 = vmatpush.msra.mxu2 %v1378_v12 }
 0x299   : > { %1403 = vmatpush.msra.mxu2 %v1377_v30 }
 0x29b   : > { %1404 = vmatpush.msra.mxu2 %v1376_v7 }
 0x29d   : > { %1405 = vmatpush.msra.mxu2 %v1375_v54 }
 0x29f   : > { %1406 = vmatpush.msra.mxu2 %v1374_v50 }
 0x2a0   : > { %1407 = vmatmul.f32.vlgmr.msra.gmra.mxu2 %v1390_v38 }
 0x323   : > { %v1408_v9 = vpop.f32.mrf.mxu2 }
 0x324   : > { %1411 = vst [vmem:[%s245_s14] sm:$0xff] %v1408_v9 }
 0x325   : > { %1941 = shalt.err (!%p1938_p3)
}
 0x326   : > { %1810 = dma.vmem_to_hbm [thread:$0]  (%p2051_p5), %s1426_s26, 128, %s1428_s28, %s1413_s29  }
 0x327 PF: > { %p1816_p4 = scmp.ge.s32.totalorder %s1976_s24, 2  ;;  %s1439_s15 = sand.u32 1, %s1964_s21  }
 0x328   : > { %s1440_s17 = scalar_lea.sflag [#allocation3], %s1439_s15 }
 0x329   : > { %p1813_p7 = pnand %p1816_p4, %p2055_p6 }
 0x32b   : > { %p1814_p8 = pneg %p1813_p7 }
 0x32d   : > { %1959 = dma.done.wait (%p1814_p8), %s1440_s17, 128  }
 0x32e   : > { %1961 = vsyncadd (%p1814_p8), %s1440_s17, 4294967168  ;;  %p16_p9 = scmp.ge.s32.totalorder %s2038_s27, 4   ;;  %s2859_s21 = smov %s1968_s22 }
 0x32f   : > { %s2860_s22 = smov %s1972_s23  ;;  %s2861_s23 = smov %s2049_s30 }
 0x330   : > { %s2862_s24 = smov %s2038_s27  ;;  %18 = sbr.rel (!%p16_p9) target bundleno = 3 (0x3), region = 79 }
 0x335   :  { %1446 = vsyncpa [#allocation3], 1 }
 0x336   :  { %1448 = vsyncpa [#allocation3 + $0x1], 1 }

</bundles_post_ra>
